<compile_context>
chip_gen: v5e
topology: v5e:2x2
jax: 0.10.0
libtpu: 0.0.40
codegen_flags: <defaults>
</compile_context>

<pallas_src>
import functools

import jax
import jax.numpy as jnp
from jax.experimental import pallas as pl
from jax.experimental.pallas import tpu as pltpu


# ---------------------------------------------------------------------------
# Parameter (buffer) construction — deterministic, mirrors the torch __init__.
# ---------------------------------------------------------------------------
def make_positional_encoding_table(d_model: int, max_len: int = 5000) -> jnp.ndarray:
    position = jnp.arange(0, max_len, dtype=jnp.float32)[:, None]          # [max_len, 1]
    div_term = jnp.exp(
        jnp.arange(0, d_model, 2, dtype=jnp.float32) * (-jnp.log(10000.0) / d_model)
    )                                                                       # [d_model//2]
    pe = jnp.zeros((max_len, d_model), dtype=jnp.float32)
    pe = pe.at[:, 0::2].set(jnp.sin(position * div_term))
    pe = pe.at[:, 1::2].set(jnp.cos(position * div_term))
    return pe                                                               # [max_len, d_model]


# ---------------------------------------------------------------------------
# Kernels (operate on the flattened [S*B, D] layout)
# ---------------------------------------------------------------------------
def _pe_add_kernel(x_ref, pe_ref, o_ref):
    # x_ref : [tile_s*B, D]  (lane/sublane-dense)
    # pe_ref: [tile_s,   D]  broadcast over batch in VMEM
    rows, d = x_ref.shape
    tile_s = pe_ref.shape[0]
    b = rows // tile_s
    pe_b = jnp.broadcast_to(pe_ref[...][:, None, :], (tile_s, b, d)).reshape(rows, d)
    o_ref[...] = (x_ref[...].astype(jnp.float32) + pe_b).astype(o_ref.dtype)


def _pe_add_dropout_kernel(x_ref, pe_ref, bits_ref, o_ref, *, threshold, scale):
    # Inverted dropout: keep iff bits >= threshold (threshold = round(p * 2^32)),
    # survivors scaled by 1/(1-p). Single integer compare per element.
    rows, d = x_ref.shape
    tile_s = pe_ref.shape[0]
    b = rows // tile_s
    pe_b = jnp.broadcast_to(pe_ref[...][:, None, :], (tile_s, b, d)).reshape(rows, d)
    y = x_ref[...].astype(jnp.float32) + pe_b
    keep = bits_ref[...] >= jnp.uint32(threshold)
    o_ref[...] = (jnp.where(keep, y, 0.0) * jnp.float32(scale)).astype(o_ref.dtype)


# ---------------------------------------------------------------------------
# Tiling heuristic: largest tile_s that divides S, keeps the block sublane
# aligned (tile_s % 8 == 0 or tile_s == S) and keeps one x block around 1 MiB
# so double-buffered x/out/bits blocks fit comfortably in scoped VMEM on
# v5e (16 MiB default), v6e (32 MiB) and v7x (64 MiB physical).
# ---------------------------------------------------------------------------
def _pick_tile_s(S, B, D, itemsize, target_bytes=1 << 20):
    valid = [t for t in range(1, S + 1) if S % t == 0 and (t % 8 == 0 or t == S)]
    fitting = [t for t in valid if t * B * D * itemsize <= target_bytes]
    if fitting:
        return max(fitting)
    return min(valid)   # fallback: smallest legal tile (only hit for awkward S)


# ---------------------------------------------------------------------------
# Wrapper
# ---------------------------------------------------------------------------
def positional_encoding_forward(x, pe, *, p=0.1, train=False, rng_key=None, tile_s=None):
    """x: [S, B, D]; pe: [max_len, D] float32. Returns [S, B, D] in x.dtype."""
    S, B, D = x.shape
    pe_s = pe[:S].astype(jnp.float32)                 # the `self.pe[:x.shape[0]]` slice
    x2 = x.reshape(S * B, D)                          # free contiguous view, lane-dense

    if tile_s is None:
        tile_s = _pick_tile_s(S, B, D, jnp.dtype(x.dtype).itemsize)
    assert S % tile_s == 0, "tile_s must divide seq_len"
    rows = tile_s * B
    grid = (S // tile_s,)

    x_spec = pl.BlockSpec((rows, D), lambda i: (i, 0))
    pe_spec = pl.BlockSpec((tile_s, D), lambda i: (i, 0))
    o_spec = pl.BlockSpec((rows, D), lambda i: (i, 0))
    out_shape = jax.ShapeDtypeStruct((S * B, D), x.dtype)

    cparams = pltpu.CompilerParams(
        dimension_semantics=("parallel",),            # independent slabs -> both TCs on v7x
        vmem_limit_bytes=32 * 1024 * 1024,            # headroom on every generation
    )

    if (not train) or p == 0.0:
        out2 = pl.pallas_call(
            _pe_add_kernel,
            out_shape=out_shape,
            grid=grid,
            in_specs=[x_spec, pe_spec],
            out_specs=o_spec,
            compiler_params=cparams,
        )(x2, pe_s)
        return out2.reshape(S, B, D)

    if rng_key is None:
        rng_key = jax.random.PRNGKey(0)               # pass a distinct key per call/layer
    bits = jax.random.bits(rng_key, (S * B, D), dtype=jnp.uint32)
    threshold = min(int(round(p * (1 << 32))), (1 << 32) - 1)
    scale = 1.0 / (1.0 - p)
    bits_spec = pl.BlockSpec((rows, D), lambda i: (i, 0))

    out2 = pl.pallas_call(
        functools.partial(_pe_add_dropout_kernel, threshold=threshold, scale=scale),
        out_shape=out_shape,
        grid=grid,
        in_specs=[x_spec, pe_spec, bits_spec],
        out_specs=o_spec,
        compiler_params=cparams,
    )(x2, pe_s, bits)
    return out2.reshape(S, B, D)


# ---------------------------------------------------------------------------
# Demo / self-check
# ---------------------------------------------------------------------------
if __name__ == "__main__":
    seq_len, batch, d_model = 16, 2, 32
    max_len = 64  # small synthetic max_len (module default is 5000)

    key = jax.random.PRNGKey(0)
    kx, kdrop = jax.random.split(key)
    x = jax.random.normal(kx, (seq_len, batch, d_model), dtype=jnp.float32)
    pe = make_positional_encoding_table(d_model, max_len)

    ref = x + pe[:seq_len][:, None, :]

    # eval mode (dropout = identity), auto-picked tile
    out = jax.block_until_ready(positional_encoding_forward(x, pe, p=0.1, train=False))
    assert out.shape == x.shape and out.dtype == x.dtype
    assert jnp.allclose(out, ref, atol=1e-6), "eval mismatch vs reference"

    # eval mode, explicit smaller tile -> multi-step pipelined grid
    out2 = jax.block_until_ready(
        positional_encoding_forward(x, pe, p=0.1, train=False, tile_s=8)
    )
    assert jnp.allclose(out2, ref, atol=1e-6), "tiled eval mismatch vs reference"

    # training mode (in-kernel inverted dropout via integer-threshold compare)
    p = 0.1
    out_tr = jax.block_until_ready(
        positional_encoding_forward(x, pe, p=p, train=True, rng_key=kdrop)
    )
    bits_ref = jax.random.bits(
        kdrop, (seq_len * batch, d_model), dtype=jnp.uint32
    ).reshape(seq_len, batch, d_model)
    thr = min(int(round(p * (1 << 32))), (1 << 32) - 1)
    keep = bits_ref >= jnp.uint32(thr)
    ref_tr = jnp.where(keep, ref, 0.0) * jnp.float32(1.0 / (1.0 - p))
    assert out_tr.shape == x.shape
    assert jnp.allclose(out_tr, ref_tr, atol=1e-5), "train mismatch vs reference"

    print("KERNEL_OK")
</pallas_src>

<mosaic_0001>
module attributes {stable_mosaic.version = 11 : i64} {
  func.func @_pe_add_kernel(%arg0: i32, %arg1: memref<32x32xf32, #tpu.memory_space<vmem>>, %arg2: memref<16x32xf32, #tpu.memory_space<vmem>>, %arg3: memref<32x32xf32, #tpu.memory_space<vmem>>) attributes {dimension_semantics = [#tpu.dimension_semantics<parallel>], iteration_bounds = array<i64: 1>, scalar_prefetch = 0 : i64, scratch_operands = 0 : i64, tpu.core_type = #tpu.core_type<tc>, window_params = [{transform_indices = @transform_0, window_bounds = array<i64: 32, 32>}, {transform_indices = @transform_1, window_bounds = array<i64: 16, 32>}, {transform_indices = @transform_2, window_bounds = array<i64: 32, 32>}]} {
    %c0 = arith.constant 0 : index
    %c0_0 = arith.constant 0 : index
    %0 = vector.load %arg2[%c0, %c0_0] : memref<16x32xf32, #tpu.memory_space<vmem>>, vector<16x32xf32>
    %1 = vector.shape_cast %0 : vector<16x32xf32> to vector<16x1x32xf32>
    %2 = vector.shape_cast %1 : vector<16x1x32xf32> to vector<16x1x32xf32>
    %3 = vector.broadcast %2 : vector<16x1x32xf32> to vector<16x2x32xf32>
    %4 = vector.shape_cast %3 : vector<16x2x32xf32> to vector<32x32xf32>
    %c0_1 = arith.constant 0 : index
    %c0_2 = arith.constant 0 : index
    %5 = vector.load %arg1[%c0_1, %c0_2] : memref<32x32xf32, #tpu.memory_space<vmem>>, vector<32x32xf32>
    %6 = arith.addf %5, %4 : vector<32x32xf32>
    %c0_3 = arith.constant 0 : index
    %c0_4 = arith.constant 0 : index
    %7 = vector.load %arg3[%c0_3, %c0_4] : memref<32x32xf32, #tpu.memory_space<vmem>>, vector<32x32xf32>
    tpu.vector_store %arg3[%c0_3, %c0_4], %6 {strides = array<i32>} : memref<32x32xf32, #tpu.memory_space<vmem>>, vector<32x32xf32>,
    return
  }
  func.func @transform_0(%arg0: i32) -> (i32, i32) {
    %c0_i32 = arith.constant 0 : i32
    %c0_i32_0 = arith.constant 0 : i32
    return %arg0, %c0_i32 : i32, i32
  }
  func.func @transform_1(%arg0: i32) -> (i32, i32) {
    %c0_i32 = arith.constant 0 : i32
    %c0_i32_0 = arith.constant 0 : i32
    return %arg0, %c0_i32 : i32, i32
  }
  func.func @transform_2(%arg0: i32) -> (i32, i32) {
    %c0_i32 = arith.constant 0 : i32
    %c0_i32_0 = arith.constant 0 : i32
    return %arg0, %c0_i32 : i32, i32
  }
}

</mosaic_0001>

<bundles_post_ra>
// kernel: tpu_custom_call.1
= control target key start
LH: loop header
LB: loop body
LE: loop exit
PB: predicated region body
PF: predicated region fallthrough
CT: control target
= control target key end

     0   :  { %7 = vsyncpa [#allocation3], 0  ;;  %s267_s0 = inlined_call_operand.hbm [shape: f32[32,32], index: 0, kind: input, shape index: {}]   ;;  %s268_s1 = inlined_call_operand.hbm [shape: f32[16,32], index: 1, kind: input, shape index: {}]   ;;  %s269_s2 = inlined_call_operand.hbm [shape: f32[32,32], index: 2, kind: output, shape index: {}]  }
   0x1   :  { %8 = vsyncpa [#allocation6], 0 }
   0x2   :  { %9 = vsyncpa [#allocation4], 0  ;;  %s14_s11 = sshll.u32 %s267_s0, 4  ;;  %s225_s12 = smov [#allocation2]   ;;  %s15_s11 = int_to_ptr.hbm [resolvable:$true] %s14_s11 }
   0x3   :  { %s16_s13 = sshll.u32 %s225_s12, 4  ;;  %s27_s16 = sshll.u32 %s268_s1, 4  ;;  %s17_s13 = int_to_ptr.vmem [resolvable:$true] %s16_s13  ;;  %s28_s16 = int_to_ptr.hbm [resolvable:$true] %s27_s16 }
   0x4   :  { %s226_s17 = smov 128   ;;  %s227_s18 = smov 8  }
   0x5   :  { %22 = dma.hbm_to_vmem [thread:$0]  %s15_s11, 512, %s17_s13, [#allocation3], %s226_s17, %s226_s17, %s227_s18  }
   0x6   :  { %s228_s19 = smov [#allocation5]  }
   0x7   :  { %s29_s20 = sshll.u32 %s228_s19, 4  ;;  %s30_s20 = int_to_ptr.vmem [resolvable:$true] %s29_s20 }
   0x8   :  { %35 = dma.hbm_to_vmem [thread:$0]  %s28_s16, 256, %s30_s20, [#allocation6], %s226_s17, %s226_s17, %s227_s18  }
   0x9   :  { %219 = dma.done.wait [#allocation3], 512  }
   0xa   :  { %220 = vsyncadd [#allocation3], 4294966784 }
   0xb   :  { %221 = dma.done.wait [#allocation6], 256  }
   0xc   :  { %222 = vsyncadd [#allocation6], 4294967040  ;;  %v44_v0 = vld [vmem:[#allocation5] sm:$0xff]  ;;  %v45_v14 = vld [vmem:[#allocation5 + $0x8] sm:$0xff]  ;;  %vm117_vm0 = vcmask 261120   ;;  %s229_s0 = smov [#allocation7]  }
   0xd   :  { %v62_v1 = vperm.slane %v44_v0, 0  ;;  %v48_v2 = vrot.slane %v44_v0, 1  ;;  %v49_v3 = vrot.slane %v44_v0, 2  ;;  %v50_v4 = vrot.slane %v44_v0, 3  ;;  %v78_v31 = vld [vmem:[#allocation2] sm:$0xff]  ;;  %v79_v33 = vld [vmem:[#allocation2 + $0x8] sm:$0xff] }
   0xe   :  { %v51_v5 = vrot.slane %v44_v0, 4  ;;  %v52_v6 = vrot.slane %v44_v0, 5  ;;  %v53_v7 = vrot.slane %v44_v0, 6  ;;  %v54_v11 = vrot.slane %v44_v0, 7  ;;  %v80_v38 = vld [vmem:[#allocation2 + $0x10] sm:$0xff]  ;;  %v81_v41 = vld [vmem:[#allocation2 + $0x18] sm:$0xff] }
   0xf   :  { %82 = vst [vmem:[#allocation1] ss:$4 sm:$0xff] %v62_v1  ;;  %v63_v8 = vperm.slane %v48_v2, 0  ;;  %v64_v9 = vperm.slane %v49_v3, 0  ;;  %v65_v10 = vperm.slane %v50_v4, 0  ;;  %v55_v17 = vrot.slane %v45_v14, 1 }
  0x10   :  { %v66_v12 = vperm.slane %v51_v5, 0  ;;  %v67_v13 = vperm.slane %v52_v6, 0  ;;  %v68_v15 = vperm.slane %v53_v7, 0  ;;  %v69_v16 = vperm.slane %v54_v11, 0  ;;  %s126_s1 = sshll.u32 %s229_s0, 4  ;;  %s128_s23 = sshll.u32 %s269_s2, 4  ;;  %s127_s1 = int_to_ptr.vmem [resolvable:$true] %s126_s1  ;;  %s129_s23 = int_to_ptr.hbm [resolvable:$true] %s128_s23 }
  0x11   :  { %84 = vst [vmem:[#allocation1 + $0x1] ss:$4 sm:$0xff] %v63_v8  ;;  %v56_v18 = vrot.slane %v45_v14, 2  ;;  %v57_v19 = vrot.slane %v45_v14, 3  ;;  %v70_v20 = vperm.slane %v45_v14, 0  ;;  %v58_v21 = vrot.slane %v45_v14, 4 }
  0x12   :  { %86 = vst [vmem:[#allocation1 + $0x2] ss:$4 sm:$0xff] %v64_v9  ;;  %v71_v22 = vperm.slane %v55_v17, 0  ;;  %v59_v23 = vrot.slane %v45_v14, 5  ;;  %v60_v25 = vrot.slane %v45_v14, 6  ;;  %v61_v28 = vrot.slane %v45_v14, 7 }
  0x13   :  { %88 = vst [vmem:[#allocation1 + $0x3] ss:$4 sm:$0xff] %v65_v10  ;;  %v72_v24 = vperm.slane %v56_v18, 0  ;;  %v73_v27 = vperm.slane %v57_v19, 0  ;;  %v74_v29 = vperm.slane %v58_v21, 0 }
  0x14   :  { %90 = vst [vmem:[#allocation1 + $0x20] ss:$4 sm:$0xff] %v66_v12  ;;  %v75_v30 = vperm.slane %v59_v23, 0  ;;  %v76_v32 = vperm.slane %v60_v25, 0  ;;  %v77_v35 = vperm.slane %v61_v28, 0 }
  0x15   :  { %92 = vst [vmem:[#allocation1 + $0x21] ss:$4 sm:$0xff] %v67_v13 }
  0x16   :  { %94 = vst [vmem:[#allocation1 + $0x22] ss:$4 sm:$0xff] %v68_v15 }
  0x17   :  { %96 = vst [vmem:[#allocation1 + $0x23] ss:$4 sm:$0xff] %v69_v16 }
  0x1a   :  { %v97_v26 = vld.sshfl [vmem:[#allocation1] sm:$0xff pattern:$0x73625140] }
  0x1b   :  { %99 = vst [vmem:[#allocation1] ss:$4 sm:$0xff] %v70_v20  ;;  %v113_v36 = vadd.f32 %v97_v26, %v78_v31 }
  0x1c   :  { %100 = vst [vmem:[#allocation1 + $0x1] ss:$4 sm:$0xff] %v71_v22 }
  0x1d   :  { %101 = vst [vmem:[#allocation1 + $0x2] ss:$4 sm:$0xff] %v72_v24 }
  0x1e   :  { %102 = vst [vmem:[#allocation1 + $0x3] ss:$4 sm:$0xff] %v73_v27  ;;  %v98_v34 = vld.sshfl [vmem:[#allocation1 + $0x20] sm:$0xff pattern:$0x73625140] }
  0x1f   :  { %103 = vst [vmem:[#allocation1 + $0x20] ss:$4 sm:$0xff] %v74_v29  ;;  %v114_v37 = vadd.f32 %v98_v34, %v79_v33 }
  0x20   :  { %104 = vst [vmem:[#allocation1 + $0x21] ss:$4 sm:$0xff] %v75_v30 }
  0x21   :  { %105 = vst [vmem:[#allocation1 + $0x22] ss:$4 sm:$0xff] %v76_v32 }
  0x22   :  { %106 = vst [vmem:[#allocation1 + $0x23] ss:$4 sm:$0xff] %v77_v35 }
  0x23   :  { %118 = vst.msk [vmem:[#allocation7] sm:$0xff] %vm117_vm0, %v113_v36 }
  0x24   :  { %119 = vst.msk [vmem:[#allocation7 + $0x8] sm:$0xff] %vm117_vm0, %v114_v37 }
  0x25   :  { %v107_v39 = vld.sshfl [vmem:[#allocation1] sm:$0xff pattern:$0x73625140] }
  0x26   :  { %v115_v40 = vadd.f32 %v107_v39, %v80_v38 }
  0x28   :  { %120 = vst.msk [vmem:[#allocation7 + $0x10] sm:$0xff] %vm117_vm0, %v115_v40 }
  0x29   :  { %v108_v42 = vld.sshfl [vmem:[#allocation1 + $0x20] sm:$0xff pattern:$0x73625140] }
  0x2a   :  { %v116_v43 = vadd.f32 %v108_v42, %v81_v41 }
  0x2c   :  { %121 = vst.msk [vmem:[#allocation7 + $0x18] sm:$0xff] %vm117_vm0, %v116_v43 }
  0x2d   :  { %134 = dma.vmem_to_hbm [thread:$0]  %s127_s1, 512, %s129_s23, [#allocation4], %s226_s17, %s226_s17, %s227_s18  }
  0x2e   :  { %223 = dma.done.wait [#allocation4], 512  }
  0x2f   :  { %224 = vsyncadd [#allocation4], 4294966784 }
  0x30   :  { %139 = vsyncpa [#allocation3], 1 }
  0x31   :  { %140 = vsyncpa [#allocation6], 1 }
  0x32   :  { %141 = vsyncpa [#allocation4], 1 }

</bundles_post_ra>
